<compile_context>
chip_gen: v6e
topology: v6e:2x2x1
jax: 0.10.0
libtpu: 0.0.40
codegen_flags: <defaults>
</compile_context>

<pallas_src>
import numpy as np
import jax
import jax.numpy as jnp
from jax import lax
from jax.experimental import pallas as pl
from jax.experimental.pallas import tpu as pltpu


def _round_up(x, m):
    return (x + m - 1) // m * m


def pack_entity_params(tables, w1, b1, w2, *, lane=128):
    """One-time (model-build-time) packing of per-feature embedding tables and MLP
    weights into lane/MXU-aligned arrays.  Zero padding keeps the math exact."""
    dims = [int(t.shape[1]) for t in tables]
    vocabs = [int(t.shape[0]) for t in tables]
    d_total = int(sum(dims))
    dp = _round_up(max(d_total, 1), lane)          # concat dim: 23 -> 128
    vp = _round_up(int(sum(vocabs)), 8)            # sublane-aligned packed row count
    h = int(w1.shape[1])
    hp = _round_up(h, lane)                        # hidden: 300 -> 384
    np_out = lane                                  # second-matmul N: 1 -> 128

    packed = jnp.zeros((vp, dp), jnp.float32)
    row_off = []
    r, c = 0, 0
    for t, v, d in zip(tables, vocabs, dims):
        packed = packed.at[r:r + v, c:c + d].set(t.astype(jnp.float32))
        row_off.append(r)
        r += v
        c += d
    row_off = jnp.asarray(row_off, jnp.int32)

    w1p = (jnp.zeros((dp, hp), jnp.float32)
           .at[:d_total, :h].set(w1.astype(jnp.float32))
           .astype(jnp.bfloat16))                                  # bf16 MXU operand
    b1p = jnp.zeros((1, hp), jnp.float32).at[:, :h].set(b1.reshape(1, h))
    w2p = jnp.zeros((hp, np_out), jnp.float32).at[:h, 0].set(w2.reshape(h))
    return packed, row_off, w1p, b1p, w2p


def entity_forward(xb, packed_table, row_off, w1p, b1p, w2p, b2, *, tile_b=128):
    """xb: int32 [B, F] categorical ids; returns sigmoid probabilities [B, 1] (f32)."""
    b_total, n_feat = xb.shape
    vp, dp = packed_table.shape
    hp = w1p.shape[1]
    np_out = w2p.shape[1]
    n_tiles = pl.cdiv(b_total, tile_b)
    b_pad = n_tiles * tile_b

    # Pad ids to a whole number of batch tiles (padded rows gather row 0; discarded).
    ids = jnp.zeros((b_pad, n_feat), jnp.int32).at[:b_total].set(xb.astype(jnp.int32))
    ids_flat = ids.reshape(b_pad * n_feat)

    def kernel(ids_ref, off_ref, tbl_ref, w1_ref, b1_ref, w2_ref, b2_ref,
               o_ref, x_scr):
        base = pl.program_id(0) * tile_b

        # Fused embedding lookup + concat: each sample's activation row is the sum of
        # F zero-padded 128-wide table rows occupying disjoint column ranges.
        def gather_row(b, carry):
            g = (base + b) * n_feat
            row = tbl_ref[pl.ds(off_ref[0] + ids_ref[g], 1), :]
            for f in range(1, n_feat):            # static unroll over features
                row = row + tbl_ref[pl.ds(off_ref[f] + ids_ref[g + f], 1), :]
            x_scr[pl.ds(b, 1), :] = row
            return carry

        lax.fori_loop(0, tile_b, gather_row, 0)

        # Linear(no_of_embed, 300) + ReLU: bf16 operands on the MXU, f32 accumulator,
        # elementwise kept in f32 (v5e-safe).
        x = x_scr[...].astype(jnp.bfloat16)
        h = jnp.dot(x, w1_ref[...], preferred_element_type=jnp.float32)
        h = jnp.maximum(h + b1_ref[...], 0.0)
        # TODO(synk): nn.Dropout(0.3) is identity in eval mode; a training-mode forward
        # would need pltpu.prng_seed + pltpu.prng_random_bits masking.

        # Linear(300, 1) with N padded to 128 -> full-width MXU pass and an unmasked,
        # lane-dense [tile_b, 128] store (column 0 carries the real output).
        y = jnp.dot(h, w2_ref[...], preferred_element_type=jnp.float32) + b2_ref[0, 0]
        o_ref[...] = pl.reciprocal(1.0 + jnp.exp(-y), approx=True)   # sigmoid (EUP)

    grid_spec = pltpu.PrefetchScalarGridSpec(
        num_scalar_prefetch=2,       # flattened ids + per-feature row offsets -> SMEM
        grid=(n_tiles,),
        in_specs=[
            pl.BlockSpec((vp, dp), lambda i, _ids, _off: (0, 0)),      # packed table (VMEM resident)
            pl.BlockSpec((dp, hp), lambda i, _ids, _off: (0, 0)),      # w1 (bf16)
            pl.BlockSpec((1, hp), lambda i, _ids, _off: (0, 0)),       # b1
            pl.BlockSpec((hp, np_out), lambda i, _ids, _off: (0, 0)),  # w2 (N padded to 128)
            pl.BlockSpec(memory_space=pltpu.MemorySpace.SMEM),         # b2 scalar
        ],
        out_specs=pl.BlockSpec((tile_b, np_out), lambda i, _ids, _off: (i, 0)),
        scratch_shapes=[pltpu.VMEM((tile_b, dp), jnp.float32)],        # gathered activations
    )

    out = pl.pallas_call(
        kernel,
        out_shape=jax.ShapeDtypeStruct((b_pad, np_out), jnp.float32),
        grid_spec=grid_spec,
        compiler_params=pltpu.CompilerParams(
            dimension_semantics=("parallel",)),   # batch tiles -> both v7x TensorCores
    )(ids_flat, row_off, packed_table, w1p, b1p, w2p, b2)

    return out[:b_total, :1]


if __name__ == "__main__":
    # Synthetic deterministic setup mirroring EntityModel.__init__:
    #   per feature: embed_dim = min(ceil(nunique/2), 50), table = (nunique + 2000, dim).
    cardinalities = [10, 7, 23, 4]
    embed_dims = [int(min(np.ceil(c / 2), 50)) for c in cardinalities]
    no_of_embed = int(sum(embed_dims))            # 23 -> Linear(23, 300)
    hidden = 300
    batch = 8
    n_feat = len(cardinalities)

    key = jax.random.PRNGKey(0)
    keys = jax.random.split(key, n_feat + 5)

    tables = [jax.random.normal(keys[i], (c + 2000, d), dtype=jnp.float32)
              for i, (c, d) in enumerate(zip(cardinalities, embed_dims))]
    w1 = jax.random.normal(keys[n_feat + 0], (no_of_embed, hidden), jnp.float32) / np.sqrt(no_of_embed)
    b1 = jax.random.normal(keys[n_feat + 1], (1, hidden), jnp.float32) * 0.01
    w2 = jax.random.normal(keys[n_feat + 2], (hidden, 1), jnp.float32) / np.sqrt(hidden)
    b2 = jax.random.normal(keys[n_feat + 3], (1, 1), jnp.float32) * 0.01

    id_keys = jax.random.split(keys[n_feat + 4], n_feat)
    xb = jnp.stack(
        [jax.random.randint(id_keys[i], (batch,), 0, cardinalities[i], dtype=jnp.int32)
         for i in range(n_feat)], axis=1)          # [B, F] int32

    # One-time packing (model-build time, not per forward call).
    packed_table, row_off, w1p, b1p, w2p = pack_entity_params(tables, w1, b1, w2)

    fwd = jax.jit(entity_forward)
    out = jax.block_until_ready(fwd(xb, packed_table, row_off, w1p, b1p, w2p, b2))
    assert out.shape == (batch, 1)

    # Plain-JAX f32 reference (original unpadded params) for a sanity check.
    cat = jnp.concatenate(
        [jnp.take(tables[i], xb[:, i], axis=0) for i in range(n_feat)], axis=1)
    ref = 1.0 / (1.0 + jnp.exp(-(jnp.maximum(cat @ w1 + b1, 0.0) @ w2 + b2)))
    max_err = float(jnp.max(jnp.abs(out - ref)))
    assert np.isfinite(max_err) and max_err < 5e-2, f"max abs err vs f32 reference: {max_err}"
    print("KERNEL_OK")
</pallas_src>

<mosaic_0001>
module attributes {stable_mosaic.version = 11 : i64} {
  func.func @kernel(%arg0: i32, %arg1: memref<512xi32, #tpu.memory_space<smem>>, %arg2: memref<4xi32, #tpu.memory_space<smem>>, %arg3: memref<8048x128xf32, #tpu.memory_space<vmem>>, %arg4: memref<128x384xbf16, #tpu.memory_space<vmem>>, %arg5: memref<1x384xf32, #tpu.memory_space<vmem>>, %arg6: memref<384x128xf32, #tpu.memory_space<vmem>>, %arg7: memref<1x1xf32, #tpu.memory_space<smem>>, %arg8: memref<128x128xf32, #tpu.memory_space<vmem>>, %arg9: memref<128x128xf32, #tpu.memory_space<vmem>>) attributes {dimension_semantics = [#tpu.dimension_semantics<parallel>], iteration_bounds = array<i64: 1>, scalar_prefetch = 2 : i64, scratch_operands = 1 : i64, tpu.core_type = #tpu.core_type<tc>, window_params = [{pipeline_mode = #tpu.pipeline_mode<synchronous>, transform_indices = @transform_0, window_bounds = array<i64: 8048, 128>}, {pipeline_mode = #tpu.pipeline_mode<synchronous>, transform_indices = @transform_1, window_bounds = array<i64: 128, 384>}, {pipeline_mode = #tpu.pipeline_mode<synchronous>, transform_indices = @transform_2, window_bounds = array<i64: 1, 384>}, {pipeline_mode = #tpu.pipeline_mode<synchronous>, transform_indices = @transform_3, window_bounds = array<i64: 384, 128>}, {transform_indices = @transform_4, window_bounds = array<i64: 1, 1>}, {transform_indices = @transform_5, window_bounds = array<i64: 128, 128>}]} {
    %c128_i32 = arith.constant 128 : i32
    %0 = arith.muli %arg0, %c128_i32 : i32
    %c0_i32 = arith.constant 0 : i32
    %c128_i32_0 = arith.constant 128 : i32
    %1 = arith.addi %c0_i32, %c128_i32_0 : i32
    %c1_i32 = arith.constant 1 : i32
    scf.for %arg10 = %c0_i32 to %1 step %c1_i32  : i32 {
      %23 = arith.addi %0, %arg10 : i32
      %c4_i32 = arith.constant 4 : i32
      %24 = arith.muli %23, %c4_i32 : i32
      %c0_17 = arith.constant 0 : index
      %25 = memref.load %arg2[%c0_17] : memref<4xi32, #tpu.memory_space<smem>>
      %26 = arith.index_cast %24 : i32 to index
      %27 = memref.load %arg1[%26] : memref<512xi32, #tpu.memory_space<smem>>
      %28 = arith.addi %25, %27 : i32
      %29 = arith.index_cast %28 : i32 to index
      %c0_18 = arith.constant 0 : index
      %30 = vector.load %arg3[%29, %c0_18] : memref<8048x128xf32, #tpu.memory_space<vmem>>, vector<1x128xf32>
      %c1 = arith.constant 1 : index
      %31 = memref.load %arg2[%c1] : memref<4xi32, #tpu.memory_space<smem>>
      %c1_i32_19 = arith.constant 1 : i32
      %32 = arith.addi %24, %c1_i32_19 : i32
      %33 = arith.index_cast %32 : i32 to index
      %34 = memref.load %arg1[%33] : memref<512xi32, #tpu.memory_space<smem>>
      %35 = arith.addi %31, %34 : i32
      %36 = arith.index_cast %35 : i32 to index
      %c0_20 = arith.constant 0 : index
      %37 = vector.load %arg3[%36, %c0_20] : memref<8048x128xf32, #tpu.memory_space<vmem>>, vector<1x128xf32>
      %38 = arith.addf %30, %37 : vector<1x128xf32>
      %c2 = arith.constant 2 : index
      %39 = memref.load %arg2[%c2] : memref<4xi32, #tpu.memory_space<smem>>
      %c2_i32 = arith.constant 2 : i32
      %40 = arith.addi %24, %c2_i32 : i32
      %41 = arith.index_cast %40 : i32 to index
      %42 = memref.load %arg1[%41] : memref<512xi32, #tpu.memory_space<smem>>
      %43 = arith.addi %39, %42 : i32
      %44 = arith.index_cast %43 : i32 to index
      %c0_21 = arith.constant 0 : index
      %45 = vector.load %arg3[%44, %c0_21] : memref<8048x128xf32, #tpu.memory_space<vmem>>, vector<1x128xf32>
      %46 = arith.addf %38, %45 : vector<1x128xf32>
      %c3 = arith.constant 3 : index
      %47 = memref.load %arg2[%c3] : memref<4xi32, #tpu.memory_space<smem>>
      %c3_i32 = arith.constant 3 : i32
      %48 = arith.addi %24, %c3_i32 : i32
      %49 = arith.index_cast %48 : i32 to index
      %50 = memref.load %arg1[%49] : memref<512xi32, #tpu.memory_space<smem>>
      %51 = arith.addi %47, %50 : i32
      %52 = arith.index_cast %51 : i32 to index
      %c0_22 = arith.constant 0 : index
      %53 = vector.load %arg3[%52, %c0_22] : memref<8048x128xf32, #tpu.memory_space<vmem>>, vector<1x128xf32>
      %54 = arith.addf %46, %53 : vector<1x128xf32>
      %55 = arith.index_cast %arg10 : i32 to index
      %c0_23 = arith.constant 0 : index
      %56 = vector.load %arg9[%55, %c0_23] : memref<128x128xf32, #tpu.memory_space<vmem>>, vector<1x128xf32>
      tpu.vector_store %arg9[%55, %c0_23], %54 {strides = array<i32>} : memref<128x128xf32, #tpu.memory_space<vmem>>, vector<1x128xf32>,
    }
    %c128_i32_1 = arith.constant 128 : i32
    %c0 = arith.constant 0 : index
    %c0_2 = arith.constant 0 : index
    %2 = vector.load %arg9[%c0, %c0_2] : memref<128x128xf32, #tpu.memory_space<vmem>>, vector<128x128xf32>
    %3 = arith.truncf %2 : vector<128x128xf32> to vector<128x128xbf16>
    %c0_3 = arith.constant 0 : index
    %c0_4 = arith.constant 0 : index
    %4 = vector.load %arg4[%c0_3, %c0_4] : memref<128x384xbf16, #tpu.memory_space<vmem>>, vector<128x384xbf16>
    %cst = arith.constant dense<0.000000e+00> : vector<128x384xf32>
    %5 = tpu.matmul %3, %4, %cst {dimension_numbers = #tpu.dot_dimension_numbers<[1], [0], [0], [1], [0, 0, 1, 1], [], []>} : vector<128x128xbf16>, vector<128x384xbf16>, vector<128x384xf32> -> vector<128x384xf32>
    %c0_5 = arith.constant 0 : index
    %c0_6 = arith.constant 0 : index
    %6 = vector.load %arg5[%c0_5, %c0_6] : memref<1x384xf32, #tpu.memory_space<vmem>>, vector<1x384xf32>
    %7 = vector.broadcast %6 : vector<1x384xf32> to vector<128x384xf32>
    %8 = arith.addf %5, %7 : vector<128x384xf32>
    %cst_7 = arith.constant 0.000000e+00 : f32
    %9 = vector.broadcast %cst_7 : f32 to vector<128x384xf32>
    %10 = arith.maximumf %8, %9 : vector<128x384xf32>
    %c0_8 = arith.constant 0 : index
    %c0_9 = arith.constant 0 : index
    %11 = vector.load %arg6[%c0_8, %c0_9] : memref<384x128xf32, #tpu.memory_space<vmem>>, vector<384x128xf32>
    %cst_10 = arith.constant dense<0.000000e+00> : vector<128x128xf32>
    %12 = tpu.matmul %10, %11, %cst_10 {dimension_numbers = #tpu.dot_dimension_numbers<[1], [0], [0], [1], [0, 0, 1, 1], [], []>} : vector<128x384xf32>, vector<384x128xf32>, vector<128x128xf32> -> vector<128x128xf32>
    %c0_11 = arith.constant 0 : index
    %c0_12 = arith.constant 0 : index
    %13 = memref.load %arg7[%c0_11, %c0_12] : memref<1x1xf32, #tpu.memory_space<smem>>
    %14 = vector.broadcast %13 : f32 to vector<128x128xf32>
    %15 = arith.addf %12, %14 : vector<128x128xf32>
    %cst_13 = arith.constant 0.000000e+00 : f32
    %16 = vector.broadcast %cst_13 : f32 to vector<128x128xf32>
    %17 = arith.subf %16, %15 : vector<128x128xf32>
    %18 = math.exp %17 : vector<128x128xf32>
    %cst_14 = arith.constant 1.000000e+00 : f32
    %19 = vector.broadcast %cst_14 : f32 to vector<128x128xf32>
    %20 = arith.addf %19, %18 : vector<128x128xf32>
    %21 = tpu.reciprocal %20 {approx = true} : vector<128x128xf32> -> vector<128x128xf32>
    %c0_15 = arith.constant 0 : index
    %c0_16 = arith.constant 0 : index
    %22 = vector.load %arg8[%c0_15, %c0_16] : memref<128x128xf32, #tpu.memory_space<vmem>>, vector<128x128xf32>
    tpu.vector_store %arg8[%c0_15, %c0_16], %21 {strides = array<i32>} : memref<128x128xf32, #tpu.memory_space<vmem>>, vector<128x128xf32>,
    return
  }
  func.func @transform_0(%arg0: i32, %arg1: memref<512xi32, #tpu.memory_space<smem>>, %arg2: memref<4xi32, #tpu.memory_space<smem>>) -> (i32, i32) {
    %c0_i32 = arith.constant 0 : i32
    %c0_i32_0 = arith.constant 0 : i32
    %c0_i32_1 = arith.constant 0 : i32
    return %c0_i32, %c0_i32_0 : i32, i32
  }
  func.func @transform_1(%arg0: i32, %arg1: memref<512xi32, #tpu.memory_space<smem>>, %arg2: memref<4xi32, #tpu.memory_space<smem>>) -> (i32, i32) {
    %c0_i32 = arith.constant 0 : i32
    %c0_i32_0 = arith.constant 0 : i32
    %c0_i32_1 = arith.constant 0 : i32
    return %c0_i32, %c0_i32_0 : i32, i32
  }
  func.func @transform_2(%arg0: i32, %arg1: memref<512xi32, #tpu.memory_space<smem>>, %arg2: memref<4xi32, #tpu.memory_space<smem>>) -> (i32, i32) {
    %c0_i32 = arith.constant 0 : i32
    %c0_i32_0 = arith.constant 0 : i32
    %c0_i32_1 = arith.constant 0 : i32
    return %c0_i32, %c0_i32_0 : i32, i32
  }
  func.func @transform_3(%arg0: i32, %arg1: memref<512xi32, #tpu.memory_space<smem>>, %arg2: memref<4xi32, #tpu.memory_space<smem>>) -> (i32, i32) {
    %c0_i32 = arith.constant 0 : i32
    %c0_i32_0 = arith.constant 0 : i32
    %c0_i32_1 = arith.constant 0 : i32
    return %c0_i32, %c0_i32_0 : i32, i32
  }
  func.func @transform_4(%arg0: i32, %arg1: memref<512xi32, #tpu.memory_space<smem>>, %arg2: memref<4xi32, #tpu.memory_space<smem>>) -> (i32, i32) {
    %c0_i32 = arith.constant 0 : i32
    %c0_i32_0 = arith.constant 0 : i32
    %c0_i32_1 = arith.constant 0 : i32
    return %c0_i32, %c0_i32_0 : i32, i32
  }
  func.func @transform_5(%arg0: i32, %arg1: memref<512xi32, #tpu.memory_space<smem>>, %arg2: memref<4xi32, #tpu.memory_space<smem>>) -> (i32, i32) {
    %c0_i32 = arith.constant 0 : i32
    %c0_i32_0 = arith.constant 0 : i32
    return %arg0, %c0_i32 : i32, i32
  }
}

</mosaic_0001>

<bundles_post_ra>
// kernel: entity_forward.1
= control target key start
LH: loop header
LB: loop body
LE: loop exit
PB: predicated region body
PF: predicated region fallthrough
CT: control target
= control target key end

     0   :  { %s1735_s0 = inlined_call_operand.vmem [shape: s32[512], index: 0, kind: input, shape index: {}]   ;;  %s1736_s2 = inlined_call_operand.hbm [shape: f32[8048,128], index: 2, kind: input, shape index: {}]   ;;  %s1737_s3 = inlined_call_operand.hbm [shape: bf16[128,384], index: 3, kind: input, shape index: {}]   ;;  %s1738_s4 = inlined_call_operand.hbm [shape: f32[1,384], index: 4, kind: input, shape index: {}]   ;;  %s1739_s5 = inlined_call_operand.hbm [shape: f32[384,128], index: 5, kind: input, shape index: {}]   ;;  %s1740_s6 = inlined_call_operand.<no memory space> [shape: f32[1,1], index: 6, kind: input, shape index: {}]   ;;  %s1741_s7 = inlined_call_operand.vmem [shape: f32[128,128], index: 7, kind: output, shape index: {}]   ;;  %s1742_s1 = inlined_call_operand.hbm [shape: s32[4], index: 1, kind: input, shape index: {}]  }
   0x1   :  { %s12_s26 = sshll.u32 %s1735_s0, 4  ;;  %18 = sst [smem:[#allocation6]] %s1740_s6  ;;  %s13_s26 = int_to_ptr.vmem [resolvable:$true] %s12_s26 }
   0x2   :  { %s1397_s29 = scalar_lea.vmem %s13_s26, 64  ;;  %p1402_p1 = scmp.lt.s32.totalorder %s13_s26, %s13_s26 }
   0x3   :  { %p1398_p0 = scmp.ne.s32.totalorder %s13_s26, %s1397_s29  ;;  %p1403_p2 = scmp.lt.s32.totalorder %s1397_s29, %s1397_s29 }
   0x5   :  { %p1404_p3 = por %p1403_p2, %p1402_p1 }
   0x7   :  { %p1405_p4 = pnand %p1404_p3, %p1398_p0 }
   0x9   :  { %1408 = shalt.err (!%p1405_p4)  }
   0xa   :  { %s1513_s30 = smov [#allocation4]   ;;  %s1514_s8 = smov [#allocation5]  }
   0xb   :  { %15 = dma.vmem_to_smem %s13_s26, 64, %s1513_s30, [#allocation3] }
   0xc   :  { %17 = dma.hbm_to_smem %s1742_s1, 16, %s1514_s8, [#allocation3] }
   0xd   :  { %1501 = dma.done.wait [#allocation3], 80 }
   0xe   :  { %1502 = vsyncadd [#allocation3], 4294967216 }
   0xf   :  { %20 = sfence }
  0x10   :  { %21 = vsyncpa [#allocation8], 0 }
  0x11   :  { %22 = vsyncpa [#allocation10], 0 }
  0x12   :  { %23 = vsyncpa [#allocation13], 0  ;;  %s1515_s0 = smov [#allocation9]  }
  0x13   :  { %s41_s6 = sshll.u32 %s1515_s0, 4  ;;  %s42_s6 = int_to_ptr.vmem [resolvable:$true] %s41_s6 }
  0x14   :  { %s1425_s11 = scalar_lea.vmem %s42_s6, 3072  ;;  %p1430_p6 = scmp.lt.s32.totalorder %s42_s6, %s42_s6 }
  0x15   :  { %p1426_p5 = scmp.ne.s32.totalorder %s42_s6, %s1425_s11  ;;  %p1431_p7 = scmp.lt.s32.totalorder %s1425_s11, %s1425_s11 }
  0x17   :  { %p1432_p8 = por %p1431_p7, %p1430_p6 }
  0x19   :  { %p1433_p9 = pnand %p1432_p8, %p1426_p5 }
  0x1b   :  { %1436 = shalt.err (!%p1433_p9)
}
  0x1c   :  { %s1516_s12 = smov 192   ;;  %s1517_s13 = smov 12  }
  0x1d   :  { %47 = dma.hbm_to_vmem [thread:$0]  %s1737_s3, 3072, %s42_s6, [#allocation10], %s1516_s12, %s1516_s12, %s1517_s13  }
  0x1e   :  { %s1518_s15 = smov [#allocation7]  }
  0x1f   :  { %s29_s16 = sshll.u32 %s1518_s15, 4  ;;  %s30_s16 = int_to_ptr.vmem [resolvable:$true] %s29_s16 }
  0x20   :  { %s1445_s17 = scalar_lea.vmem %s30_s16, 128768  ;;  %p1450_p11 = scmp.lt.s32.totalorder %s30_s16, %s30_s16 }
  0x21   :  { %p1446_p10 = scmp.ne.s32.totalorder %s30_s16, %s1445_s17  ;;  %p1451_p12 = scmp.lt.s32.totalorder %s1445_s17, %s1445_s17 }
  0x23   :  { %p1452_p13 = por %p1451_p12, %p1450_p11 }
  0x25   :  { %p1453_p0 = pnand %p1452_p13, %p1446_p10 }
  0x27   :  { %1456 = shalt.err (!%p1453_p0)
}
  0x28   :  { %s1519_s18 = smov 128   ;;  %s1520_s19 = smov 8  }
  0x29   :  { %35 = dma.hbm_to_vmem [thread:$0]  %s1736_s2, 128768, %s30_s16, [#allocation8], %s1519_s18, %s1519_s18, %s1520_s19  }
  0x2a   :  { %s1521_s22 = smov [#allocation11]   ;;  %s1522_s24 = smov [#allocation12]  }
  0x2b   :  { %s54_s23 = sshll.u32 %s1521_s22, 4  ;;  %s63_s3 = sshll.u32 %s1522_s24, 4  ;;  %s55_s23 = int_to_ptr.vmem [resolvable:$true] %s54_s23  ;;  %s64_s3 = int_to_ptr.vmem [resolvable:$true] %s63_s3 }
  0x2c   :  { %s1465_s25 = scalar_lea.vmem %s55_s23, 48  ;;  %s1469_s26 = scalar_lea.vmem %s55_s23, 64 }
  0x2d   :  { %p1466_p1 = scmp.ne.s32.totalorder %s55_s23, %s1465_s25  ;;  %p1470_p2 = scmp.lt.s32.totalorder %s55_s23, %s55_s23 }
  0x2e   :  { %p1471_p3 = scmp.lt.s32.totalorder %s1469_s26, %s1465_s25 }
  0x30   :  { %p1472_p4 = por %p1471_p3, %p1470_p2 }
  0x32   :  { %p1473_p5 = pnand %p1472_p4, %p1466_p1 }
  0x34   :  { %1476 = shalt.err (!%p1473_p5)
}
  0x35   :  { %57 = dma.hbm_to_vmem [thread:$0]  %s1738_s4, 48, %s55_s23, [#allocation10]  }
  0x36   :  { %s1485_s29 = scalar_lea.vmem %s64_s3, 6144  ;;  %p1490_p7 = scmp.lt.s32.totalorder %s64_s3, %s64_s3 }
  0x37   :  { %p1486_p6 = scmp.ne.s32.totalorder %s64_s3, %s1485_s29  ;;  %p1491_p8 = scmp.lt.s32.totalorder %s1485_s29, %s1485_s29 }
  0x39   :  { %p1492_p9 = por %p1491_p8, %p1490_p7 }
  0x3b   :  { %p1493_p10 = pnand %p1492_p9, %p1486_p6 }
  0x3d   :  { %1496 = shalt.err (!%p1493_p10)
}
  0x3e   :  { %69 = dma.hbm_to_vmem [thread:$0]  %s1739_s5, 6144, %s64_s3, [#allocation13], %s1519_s18, %s1519_s18, %s1520_s19  }
  0x3f   :  { %1503 = dma.done.wait [#allocation8], 128768  }
  0x40   :  { %1504 = vsyncadd [#allocation8], 4294838528 }
  0x41   :  { %1505 = dma.done.wait [#allocation10], 3120  }
  0x42   :  { %1506 = vsyncadd [#allocation10], 4294964176 }
  0x43   :  { %1507 = dma.done.wait [#allocation13], 6144  }
  0x44   :  { %1508 = vsyncadd [#allocation13], 4294961152  ;;  %s1585_s8 = smov 0  }
  0x45 LB: > { %s94_s4 = sld [smem:[#allocation5]]  ;;  %s1038_s10 = sshll.u32 %s1511_s8, 2  ;;  %s1511_s8 = sphi %s1585_s8, %s91_s8  }
  0x46   : > { %s1039_s9 = sld [smem:[#allocation5 + $0x1]]  ;;  %s100_s5 = sadd.s32 1, %s1038_s10 }
  0x47   : > { %s1040_s0 = sld [smem:[#allocation5 + $0x2]]  ;;  %s107_s12 = sadd.s32 2, %s1038_s10 }
  0x48   : > { %s95_s6 = sld [smem:[#allocation4 + %s1038_s10]]  ;;  %s114_s14 = sadd.s32 3, %s1038_s10 }
  0x49   : > { %s101_s11 = sld [smem:[#allocation4 + %s100_s5]]  ;;  %s120_s24 = scalar_lea.vmem [#allocation2], %s1511_s8 }
  0x4a   : > { %s108_s13 = sld [smem:[#allocation4 + %s107_s12]]  ;;  %s91_s8 = sadd.s32 1, %s1511_s8  }
  0x4b   : > { %s1041_s1 = sld [smem:[#allocation5 + $0x3]]  ;;  %p88_p11 = scmp.ge.s32.totalorder %s91_s8, 128  }
  0x4c   : > { %s115_s15 = sld [smem:[#allocation4 + %s114_s14]]  ;;  %v1301_v7 = vld [vmem:[#allocation9 + $0xac] ss:$12 sps:$4 sm:$0xff] (%p88_p11)   ;;  %v1303_v8 = vld [vmem:[#allocation9 + $0xa8] ss:$12 sps:$4 sm:$0xff] (%p88_p11)   ;;  %v1523_v9 = vmov (%p88_p11), 0  }
  0x4d   :  { %355 = vmatprep.mubr.bf16.mxu0 (%p88_p11), %v1523_v9  ;;  %323 = vmatprep.subr.bf16.mxu0 (%p88_p11), %v1301_v7  ;;  %v1304_v10 = vld [vmem:[#allocation9 + $0xb0] ss:$12 sps:$4 sm:$0xff] (%p88_p11)   ;;  %v1305_v11 = vld [vmem:[#allocation9 + $0x94] ss:$12 sps:$4 sm:$0xff] (%p88_p11)   ;;  %v1308_v13 = vld [vmem:[#allocation9 + $0x98] ss:$12 sps:$4 sm:$0xff] (%p88_p11)  }
  0x4e   : > { %s96_s16 = sadd.s32 %s95_s6, %s94_s4  ;;  %324 = vmatpush1.bf16.msra.mxu0 (%p88_p11), %v1303_v8  ;;  %v1307_v12 = vld [vmem:[#allocation9 + $0x90] ss:$12 sps:$4 sm:$0xff] (%p88_p11)   ;;  %1194 = vmatprep.subr.bf16.mxu1 (%p88_p11), %v1304_v10  ;;  %v1312_v15 = vld [vmem:[#allocation9 + $0x80] ss:$12 sps:$4 sm:$0xff] (%p88_p11)   ;;  %v1311_v16 = vld [vmem:[#allocation9 + $0x78] ss:$12 sps:$4 sm:$0xff] (%p88_p11)  }
  0x4f   : > { %s102_s17 = sadd.s32 %s1039_s9, %s101_s11  ;;  %s97_s18 = scalar_lea.vmem [#allocation7], %s96_s16  ;;  %1195 = vmatpush3.bf16.msra.mxu1 (%p88_p11), %v1304_v10  ;;  %325 = vmatprep.subr.bf16.mxu0 (%p88_p11), %v1305_v11  ;;  %v1309_v14 = vld [vmem:[#allocation9 + $0x7c] ss:$12 sps:$4 sm:$0xff] (%p88_p11)   ;;  %v1313_v17 = vld [vmem:[#allocation9 + $0x64] ss:$12 sps:$4 sm:$0xff] (%p88_p11)   ;;  %v627_v43 = vld [vmem:[#allocation12 + $0x170] sm:$0xff] (%p88_p11) }
  0x50   : > { %v98_v0 = vld [vmem:[%s97_s18] sm:$0x1]  ;;  %s109_s19 = sadd.s32 %s1040_s0, %s108_s13  ;;  %s103_s20 = scalar_lea.vmem [#allocation7], %s102_s17  ;;  %1196 = vmatprep.subr.bf16.mxu1 (%p88_p11), %v1308_v13  ;;  %v1316_v18 = vld [vmem:[#allocation9 + $0x68] ss:$12 sps:$4 sm:$0xff] (%p88_p11)   ;;  %v628_v37 = vld [vmem:[#allocation12 + $0x178] sm:$0xff] (%p88_p11) }
  0x51   : > { %v104_v1 = vld [vmem:[%s103_s20] sm:$0x1]  ;;  %s110_s21 = scalar_lea.vmem [#allocation7], %s109_s19  ;;  %v1315_v19 = vld [vmem:[#allocation9 + $0x60] ss:$12 sps:$4 sm:$0xff] (%p88_p11)   ;;  %v611_v45 = vld [vmem:[#allocation12 + $0xf0] sm:$0xff] (%p88_p11) }
  0x52   : > { %v105_v2 = vadd.f32 %v104_v1, %v98_v0  ;;  %v111_v3 = vld [vmem:[%s110_s21] sm:$0x1]  ;;  %s116_s22 = sadd.s32 %s1041_s1, %s115_s15  ;;  %326 = vmatpush1.bf16.msra.mxu0 (%p88_p11), %v1307_v12  ;;  %v1317_v20 = vld [vmem:[#allocation9 + $0x4c] ss:$12 sps:$4 sm:$0xff] (%p88_p11)   ;;  %v1319_v22 = vld [vmem:[#allocation9 + $0x48] ss:$12 sps:$4 sm:$0xff] (%p88_p11)  }
  0x53   : > { %s117_s23 = scalar_lea.vmem [#allocation7], %s116_s22  ;;  %327 = vmatprep.subr.bf16.mxu0 (%p88_p11), %v1309_v14  ;;  %1197 = vmatpush3.bf16.msra.mxu1 (%p88_p11), %v1308_v13  ;;  %v1320_v21 = vld [vmem:[#allocation9 + $0x50] ss:$12 sps:$4 sm:$0xff] (%p88_p11)   ;;  %v1321_v23 = vld [vmem:[#allocation9 + $0x34] ss:$12 sps:$4 sm:$0xff] (%p88_p11)   ;;  %v625_v54 = vld [vmem:[#allocation12 + $0x160] sm:$0xff] (%p88_p11) }
  0x54   : > { %v112_v4 = vadd.f32 %v111_v3, %v105_v2  ;;  %v118_v5 = vld [vmem:[%s117_s23] sm:$0x1]  ;;  %90 = sbr.rel (!%p88_p11) target bundleno = 69 (0x45), region = 68  ;;  %1198 = vmatprep.subr.bf16.mxu1 (%p88_p11), %v1312_v15  ;;  %v1324_v24 = vld [vmem:[#allocation9 + $0x38] ss:$12 sps:$4 sm:$0xff] (%p88_p11)   ;;  %v612_v40 = vld [vmem:[#allocation12 + $0xf8] sm:$0xff] (%p88_p11) }
  0x55   :  { %v1323_v26 = vld [vmem:[#allocation9 + $0x30] ss:$12 sps:$4 sm:$0xff] (%p88_p11)   ;;  %v1328_v30 = vld [vmem:[#allocation9 + $0x20] ss:$12 sps:$4 sm:$0xff] (%p88_p11)   ;;  %v1327_v31 = vld [vmem:[#allocation9 + $0x18] ss:$12 sps:$4 sm:$0xff] (%p88_p11)  }
  0x56   : > { %v119_v6 = vadd.f32 %v118_v5, %v112_v4  ;;  %328 = vmatpush1.bf16.msra.mxu0 (%p88_p11), %v1311_v16  ;;  %v1325_v28 = vld [vmem:[#allocation9 + $0x1c] ss:$12 sps:$4 sm:$0xff] (%p88_p11)   ;;  %v1329_v32 = vld [vmem:[#allocation9 + $0x4] ss:$12 sps:$4 sm:$0xff] (%p88_p11)   ;;  %v1331_v34 = vld [vmem:[#allocation9] ss:$12 sps:$4 sm:$0xff] (%p88_p11)  }
  0x57   :  { %329 = vmatprep.subr.bf16.mxu0 (%p88_p11), %v1313_v17  ;;  %1199 = vmatpush3.bf16.msra.mxu1 (%p88_p11), %v1312_v15  ;;  %v1332_v33 = vld [vmem:[#allocation9 + $0x8] ss:$12 sps:$4 sm:$0xff] (%p88_p11)   ;;  %v596_v44 = vld [vmem:[#allocation12 + $0x78] sm:$0xff] (%p88_p11)  ;;  %v626_v48 = vld [vmem:[#allocation12 + $0x168] sm:$0xff] (%p88_p11)  ;;  %s629_s3 = sld [smem:[#allocation6]] (%p88_p11) }
  0x58   : > { %121 = vst [vmem:[%s120_s24] sm:$0x1] %v119_v6  ;;  %1200 = vmatprep.subr.bf16.mxu1 (%p88_p11), %v1316_v18  ;;  %v595_v47 = vld [vmem:[#allocation12 + $0x70] sm:$0xff] (%p88_p11)  ;;  %v610_v51 = vld [vmem:[#allocation12 + $0xe8] sm:$0xff] (%p88_p11)  ;;  %v609_v55 = vld [vmem:[#allocation12 + $0xe0] sm:$0xff] (%p88_p11) }
  0x59   :  { %v594_v53 = vld [vmem:[#allocation12 + $0x68] sm:$0xff]  ;;  %v593_v57 = vld [vmem:[#allocation12 + $0x60] sm:$0xff]  ;;  %v608_v59 = vld [vmem:[#allocation12 + $0xd8] sm:$0xff] }
  0x5a   :  { %330 = vmatpush1.bf16.msra.mxu0 %v1315_v19  ;;  %v592_v60 = vld [vmem:[#allocation12 + $0x58] sm:$0xff]  ;;  %v607_v61 = vld [vmem:[#allocation12 + $0xd0] sm:$0xff]  ;;  %v606_v3 = vld [vmem:[#allocation12 + $0xc8] sm:$0xff] }
  0x5b   :  { %331 = vmatprep.subr.bf16.mxu0 %v1317_v20  ;;  %1201 = vmatpush3.bf16.msra.mxu1 %v1316_v18  ;;  %v591_v63 = vld [vmem:[#allocation12 + $0x50] sm:$0xff]  ;;  %v624_v0 = vld [vmem:[#allocation12 + $0x158] sm:$0xff]  ;;  %v590_v5 = vld [vmem:[#allocation12 + $0x48] sm:$0xff] }
  0x5c   :  { %1202 = vmatprep.subr.bf16.mxu1 %v1320_v21  ;;  %v623_v6 = vld [vmem:[#allocation12 + $0x150] sm:$0xff]  ;;  %v605_v7 = vld [vmem:[#allocation12 + $0xc0] sm:$0xff]  ;;  %v604_v12 = vld [vmem:[#allocation12 + $0xb8] sm:$0xff] }
  0x5d   :  { %v589_v10 = vld [vmem:[#allocation12 + $0x40] sm:$0xff]  ;;  %v588_v13 = vld [vmem:[#allocation12 + $0x38] sm:$0xff]  ;;  %v622_v14 = vld [vmem:[#allocation12 + $0x148] sm:$0xff] }
  0x5e   :  { %332 = vmatpush1.bf16.msra.mxu0 %v1319_v22  ;;  %v603_v16 = vld [vmem:[#allocation12 + $0xb0] sm:$0xff]  ;;  %v621_v19 = vld [vmem:[#allocation12 + $0x140] sm:$0xff]  ;;  %v602_v20 = vld [vmem:[#allocation12 + $0xa8] sm:$0xff] }
  0x5f   :  { %v122_v25 = vld [vmem:[#allocation2] sm:$0xff]  ;;  %v123_v27 = vld [vmem:[#allocation2 + $0x8] sm:$0xff]  ;;  %333 = vmatprep.subr.bf16.mxu0 %v1321_v23  ;;  %1203 = vmatpush3.bf16.msra.mxu1 %v1320_v21  ;;  %v124_v35 = vld [vmem:[#allocation2 + $0x10] sm:$0xff] }
  0x60   :  { %v138_v29 = vpack.c.bf16 %v123_v27, %v122_v25  ;;  %1204 = vmatprep.subr.bf16.mxu1 %v1324_v24  ;;  %v125_v36 = vld [vmem:[#allocation2 + $0x18] sm:$0xff]  ;;  %v126_v38 = vld [vmem:[#allocation2 + $0x20] sm:$0xff]  ;;  %v127_v39 = vld [vmem:[#allocation2 + $0x28] sm:$0xff] }
  0x61   :  { %v139_v41 = vpack.c.bf16 %v125_v36, %v124_v35  ;;  %v1596_v42 = vpack.c.bf16 %v127_v39, %v126_v38  ;;  %v128_v46 = vld [vmem:[#allocation2 + $0x30] sm:$0xff]  ;;  %v129_v49 = vld [vmem:[#allocation2 + $0x38] sm:$0xff]  ;;  %v130_v50 = vld [vmem:[#allocation2 + $0x40] sm:$0xff] }
  0x62   :  { %1210 = vmatprep.mubr.bf16.mxu1 %v138_v29  ;;  %334 = vmatpush1.bf16.msra.mxu0 %v1323_v26  ;;  %v131_v52 = vld [vmem:[#allocation2 + $0x48] sm:$0xff]  ;;  %v1600_v56 = vpack.c.bf16 %v129_v49, %v128_v46  ;;  %v132_v62 = vld [vmem:[#allocation2 + $0x50] sm:$0xff]  ;;  %v133_v1 = vld [vmem:[#allocation2 + $0x58] sm:$0xff] }
  0x63   :  { %335 = vmatprep.subr.bf16.mxu0 %v1325_v28  ;;  %1205 = vmatpush3.bf16.msra.mxu1 %v1324_v24  ;;  %v1602_v58 = vpack.c.bf16 %v131_v52, %v130_v50  ;;  %v134_v2 = vld [vmem:[#allocation2 + $0x60] sm:$0xff]  ;;  %v135_v4 = vld [vmem:[#allocation2 + $0x68] sm:$0xff]  ;;  %v143_v8 = vpack.c.bf16 %v133_v1, %v132_v62  ;;  %v136_v15 = vld [vmem:[#allocation2 + $0x70] sm:$0xff] }
  0x64   :  { %1206 = vmatprep.subr.bf16.mxu1 %v1328_v30  ;;  %v144_v11 = vpack.c.bf16 %v135_v4, %v134_v2  ;;  %v137_v17 = vld [vmem:[#allocation2 + $0x78] sm:$0xff]  ;;  %v587_v18 = vld [vmem:[#allocation12 + $0x30] sm:$0xff]  ;;  %v620_v23 = vld [vmem:[#allocation12 + $0x138] sm:$0xff] }
  0x65   :  { %v586_v21 = vld [vmem:[#allocation12 + $0x28] sm:$0xff]  ;;  %v145_v22 = vpack.c.bf16 %v137_v17, %v136_v15  ;;  %v601_v24 = vld [vmem:[#allocation12 + $0xa0] sm:$0xff]  ;;  %v619_v26 = vld [vmem:[#allocation12 + $0x130] sm:$0xff] }
  0x66   :  { %336 = vmatpush1.bf16.msra.mxu0 %v1327_v31  ;;  %v585_v25 = vld [vmem:[#allocation12 + $0x20] sm:$0xff]  ;;  %v600_v27 = vld [vmem:[#allocation12 + $0x98] sm:$0xff]  ;;  %v618_v28 = vld [vmem:[#allocation12 + $0x128] sm:$0xff] }
  0x67   :  { %337 = vmatprep.subr.bf16.mxu0 %v1329_v32  ;;  %1207 = vmatpush3.bf16.msra.mxu1 %v1328_v30  ;;  %v599_v30 = vld [vmem:[#allocation12 + $0x90] sm:$0xff]  ;;  %v617_v31 = vld [vmem:[#allocation12 + $0x120] sm:$0xff]  ;;  %v582_v35 = vld [vmem:[#allocation12 + $0x8] sm:$0xff] }
  0x68   :  { %1208 = vmatprep.subr.bf16.mxu1 %v1332_v33  ;;  %v583_v32 = vld [vmem:[#allocation12 + $0x10] sm:$0xff]  ;;  %v614_v38 = vld [vmem:[#allocation12 + $0x108] sm:$0xff]  ;;  %v613_v39 = vld [vmem:[#allocation12 + $0x100] sm:$0xff] }
  0x69   :  { %v615_v36 = vld [vmem:[#allocation12 + $0x110] sm:$0xff] }
  0x6a   :  { %338 = vmatpush1.bf16.msra.mxu0 %v1331_v34  ;;  %v616_v34 = vld [vmem:[#allocation12 + $0x118] sm:$0xff] }
  0x6b   :  { %1226 = vmatprep.subr.mxu0 %v628_v37  ;;  %1209 = vmatpush3.bf16.msra.mxu1 %v1332_v33  ;;  %v598_v33 = vld [vmem:[#allocation12 + $0x88] sm:$0xff] }
  0x6c   :  { %1082 = vmatprep.subr.mxu1 %v612_v40  ;;  %v180_v40 = vlaneseq }
  0x6d   :  { %356 = vmatmul.mubr.bf16.vlgmr.msra.gmra.mxu0 %v138_v29  ;;  %v584_v29 = vld [vmem:[#allocation12 + $0x18] sm:$0xff] }
  0x6e   :  { %365 = vmatprep.mubr.bf16.mxu0 %v1523_v9  ;;  %1227 = vmatpush3.msra.mxu0 %v628_v37  ;;  %v581_v37 = vld [vmem:[#allocation12] sm:$0xff] }
  0x6f   :  { %1211 = vmatmul.mubr.bf16.vlgmr.msra.gmra.mxu1 %v139_v41  ;;  %1228 = vmatprep.subr.mxu0 %v627_v43 }
  0x70   :  { %1214 = vmatprep.mubr.bf16.mxu1 %v1596_v42  ;;  %1083 = vmatpush3.msra.mxu1 %v596_v44 }
  0x71   :  { %1084 = vmatprep.subr.mxu1 %v611_v45  ;;  %1229 = vmatpush3.msra.mxu0 %v627_v43  ;;  %v178_v43 = vld [vmem:[#allocation11] sm:$0x7] }
  0x72   :  { %1085 = vmatpush3.msra.mxu1 %v595_v47  ;;  %1230 = vmatprep.subr.mxu0 %v626_v48 }
  0x73   :  { %1086 = vmatprep.subr.mxu1 %v610_v51  ;;  %1231 = vmatpush3.msra.mxu0 %v626_v48 }
  0x74   :  { %1087 = vmatpush3.msra.mxu1 %v594_v53  ;;  %1232 = vmatprep.subr.mxu0 %v625_v54 }
  0x75   :  { %366 = vmatmul.mubr.bf16.gmra.mxu0 %v139_v41  ;;  %1088 = vmatprep.subr.mxu1 %v609_v55  ;;  %v181_v41 = vshrl.u32 %v180_v40, 7 }
  0x76   :  { %375 = vmatprep.mubr.bf16.mxu0 %v1523_v9  ;;  %1089 = vmatpush3.msra.mxu1 %v593_v57 }
  0x77   :  { %1215 = vmatmul.mubr.bf16.gmra.mxu1 %v1600_v56  ;;  %1090 = vmatprep.subr.mxu1 %v608_v59  ;;  %v186_v44 = vsub.s32 1, %v181_v41  ;;  %v190_v45 = vsub.s32 2, %v181_v41 }
  0x78   :  { %1218 = vmatprep.mubr.bf16.mxu1 %v1602_v58  ;;  %1091 = vmatpush3.msra.mxu1 %v592_v60 }
  0x79   :  { %1092 = vmatprep.subr.mxu1 %v607_v61  ;;  %1233 = vmatpush3.msra.mxu0 %v625_v54  ;;  %v1617_v47 = vrot.slane %v178_v43, %v186_v44  ;;  %v1619_v49 = vrot.slane %v178_v43, %v190_v45 }
  0x7a   :  { %1093 = vmatpush3.msra.mxu1 %v591_v63  ;;  %1234 = vmatprep.subr.mxu0 %v624_v0 }
  0x7b   :  { %1094 = vmatprep.subr.mxu1 %v606_v3  ;;  %1235 = vmatpush3.msra.mxu0 %v624_v0 }
  0x7c   :  { %1095 = vmatpush3.msra.mxu1 %v590_v5  ;;  %1236 = vmatprep.subr.mxu0 %v623_v6 }
  0x7d   :  { %376 = vmatmul.mubr.bf16.gmra.mxu0 %v1596_v42  ;;  %1096 = vmatprep.subr.mxu1 %v605_v7  ;;  %v182_v42 = vsub.s32 0, %v181_v41 }
  0x7e   :  { %385 = vmatprep.mubr.bf16.mxu0 %v1523_v9  ;;  %1097 = vmatpush3.msra.mxu1 %v589_v10 }
  0x7f   :  { %1219 = vmatmul.mubr.bf16.gmra.mxu1 %v143_v8  ;;  %1098 = vmatprep.subr.mxu1 %v604_v12  ;;  %v1615_v46 = vrot.slane %v178_v43, %v182_v42 }
  0x80   :  { %1222 = vmatprep.mubr.bf16.mxu1 %v144_v11  ;;  %1237 = vmatpush3.msra.mxu0 %v623_v6 }
  0x81   :  { %1099 = vmatpush3.msra.mxu1 %v588_v13  ;;  %1238 = vmatprep.subr.mxu0 %v622_v14 }
  0x82   :  { %1100 = vmatprep.subr.mxu1 %v603_v16  ;;  %1239 = vmatpush3.msra.mxu0 %v622_v14 }
  0x83   :  { %1101 = vmatpush3.msra.mxu1 %v587_v18  ;;  %1240 = vmatprep.subr.mxu0 %v621_v19 }
  0x84   :  { %1102 = vmatprep.subr.mxu1 %v602_v20  ;;  %1241 = vmatpush3.msra.mxu0 %v621_v19 }
  0x85   :  { %386 = vmatmul.mubr.bf16.gmra.mxu0 %v1600_v56  ;;  %1103 = vmatpush3.msra.mxu1 %v586_v21 }
  0x86   :  { %395 = vmatprep.mubr.bf16.mxu0 %v1523_v9  ;;  %1242 = vmatprep.subr.mxu0 %v620_v23 }
  0x87   :  { %1223 = vmatmul.mubr.bf16.gmra.mxu1 %v145_v22  ;;  %1104 = vmatprep.subr.mxu1 %v601_v24 }
  0x88   :  { %1243 = vmatpush3.msra.mxu0 %v620_v23  ;;  %1105 = vmatpush3.msra.mxu1 %v585_v25 }
  0x89   :  { %1244 = vmatprep.subr.mxu0 %v619_v26  ;;  %1106 = vmatprep.subr.mxu1 %v600_v27 }
  0x8a   :  { %1245 = vmatpush3.msra.mxu0 %v619_v26  ;;  %1107 = vmatpush3.msra.mxu1 %v584_v29 }
  0x8b   :  { %1246 = vmatprep.subr.mxu0 %v618_v28  ;;  %1108 = vmatprep.subr.mxu1 %v599_v30 }
  0x8c   :  { %1247 = vmatpush3.msra.mxu0 %v618_v28  ;;  %1109 = vmatpush3.msra.mxu1 %v583_v32 }
  0x8d   :  { %396 = vmatmul.mubr.bf16.gmra.mxu0 %v1602_v58  ;;  %1248 = vmatprep.subr.mxu0 %v617_v31 }
  0x8e   :  { %405 = vmatprep.mubr.bf16.mxu0 %v1523_v9  ;;  %1249 = vmatpush3.msra.mxu0 %v617_v31 }
  0x8f   :  { %1110 = vmatprep.subr.mxu1 %v598_v33  ;;  %1250 = vmatprep.subr.mxu0 %v616_v34 }
  0x90   :  { %1111 = vmatpush3.msra.mxu1 %v582_v35  ;;  %1251 = vmatpush3.msra.mxu0 %v616_v34 }
  0x91   :  { %1252 = vmatprep.subr.mxu0 %v615_v36 }
  0x92   :  { %1253 = vmatpush3.msra.mxu0 %v615_v36 }
  0x93   :  { %1254 = vmatprep.subr.mxu0 %v614_v38 }
  0x94   :  { %1255 = vmatpush3.msra.mxu0 %v614_v38 }
  0x95   :  { %406 = vmatmul.mubr.bf16.gmra.mxu0 %v143_v8  ;;  %1256 = vmatprep.subr.mxu0 %v613_v39 }
  0x96   :  { %415 = vmatprep.mubr.bf16.mxu0 %v1523_v9  ;;  %1257 = vmatpush3.msra.mxu0 %v613_v39 }
  0x9d   :  { %416 = vmatmul.mubr.bf16.gmra.mxu0 %v144_v11 }
  0x9e   :  { %425 = vmatprep.mubr.bf16.mxu0 %v1523_v9  ;;  %v597_v9 = vld [vmem:[#allocation12 + $0x80] sm:$0xff] }
  0x9f   :  { %1112 = vmatprep.subr.mxu1 %v597_v9 }
  0xa0   :  { %1113 = vmatpush3.msra.mxu1 %v581_v37 }
  0xa5   :  { %426 = vmatmul.mubr.bf16.gmra.mxu0 %v145_v22 }
 0x12d   :  { %v357_v48 = vpop.f32.mrf.mxu0 }
 0x12e   :  { %v358_v50 = vadd.f32 %v357_v48, %v1615_v46 }
 0x12f   :  { %v1212_v51 = vpop.f32.mrf.mxu1  ;;  %v359_v52 = vpop.f32.mrf.mxu0 }
 0x130   :  { %v360_v53 = vadd.f32 %v359_v52, %v1617_v47  ;;  %v533_v58 = vmax.f32 %v358_v50, 0.0  ;;  %v479_v59 = vadd.f32 %v1212_v51, %v1619_v49 }
 0x131   :  { %v470_v54 = vpop.f32.mrf.mxu1  ;;  %v361_v55 = vpop.f32.mrf.mxu0 }
 0x132   :  { %v534_v56 = vmax.f32 %v360_v53, 0.0  ;;  %v471_v57 = vadd.f32 %v470_v54, %v1619_v49  ;;  %v362_v60 = vadd.f32 %v361_v55, %v1615_v46  ;;  %v541_v6 = vmax.f32 %v479_v59, 0.0 }
 0x133   :  { %v1213_v61 = vpop.f32.mrf.mxu1  ;;  %v363_v62 = vpop.f32.mrf.mxu0 }
 0x134   :  { %v535_v63 = vmax.f32 %v471_v57, 0.0  ;;  %v364_v0 = vadd.f32 %v363_v62, %v1617_v47  ;;  %695 = vmatprep.mubr.f32.mxu1 %v534_v56  ;;  %v482_v3 = vadd.f32 %v1213_v61, %v1619_v49  ;;  %v536_v7 = vmax.f32 %v362_v60, 0.0 }
 0x135   :  { %v473_v1 = vpop.f32.mrf.mxu1  ;;  %v367_v2 = vpop.f32.mrf.mxu0  ;;  %696 = vmatmul.mubr.f32.vlgmr.msra.gmra.mxu1 %v533_v58 }
 0x136   :  { %v537_v4 = vmax.f32 %v364_v0, 0.0  ;;  %v474_v5 = vadd.f32 %v473_v1, %v1619_v49  ;;  %1258 = vmatprep.mubr.f32.mxu0 %v535_v63  ;;  %v368_v8 = vadd.f32 %v367_v2, %v1615_v46  ;;  %v544_v16 = vmax.f32 %v482_v3, 0.0 }
 0x137   :  { %v369_v10 = vpop.f32.mrf.mxu0  ;;  %v1216_v11 = vpop.f32.mrf.mxu1 }
 0x138   :  { %v538_v12 = vmax.f32 %v474_v5, 0.0  ;;  %v370_v13 = vadd.f32 %v369_v10, %v1617_v47  ;;  %700 = vmatprep.mubr.f32.mxu1 %v537_v4  ;;  %v539_v19 = vmax.f32 %v368_v8, 0.0  ;;  %v495_v22 = vadd.f32 %v1216_v11, %v1619_v49 }
 0x139   :  { %v371_v14 = vpop.f32.mrf.mxu0  ;;  %701 = vmatmul.mubr.f32.gmra.mxu1 %v536_v7  ;;  %v486_v15 = vpop.f32.mrf.mxu1 }
 0x13a   :  { %v540_v17 = vmax.f32 %v370_v13, 0.0  ;;  %1259 = vmatmul.mubr.f32.vlgmr.msra.gmra.mxu0 %v538_v12  ;;  %v487_v18 = vadd.f32 %v486_v15, %v1619_v49  ;;  %v372_v20 = vadd.f32 %v371_v14, %v1615_v46  ;;  %v553_v33 = vmax.f32 %v495_v22, 0.0 }
 0x13b   :  { %v373_v21 = vpop.f32.mrf.mxu0  ;;  %1261 = vmatprep.mubr.f32.mxu0 %v541_v6  ;;  %v1217_v23 = vpop.f32.mrf.mxu1 }
 0x13c   :  { %v374_v24 = vadd.f32 %v373_v21, %v1617_v47  ;;  %705 = vmatprep.mubr.f32.mxu1 %v540_v17  ;;  %v547_v25 = vmax.f32 %v487_v18, 0.0  ;;  %v498_v29 = vadd.f32 %v1217_v23, %v1619_v49  ;;  %v542_v31 = vmax.f32 %v372_v20, 0.0 }
 0x13d   :  { %v377_v26 = vpop.f32.mrf.mxu0  ;;  %706 = vmatmul.mubr.f32.gmra.mxu1 %v539_v19  ;;  %v489_v27 = vpop.f32.mrf.mxu1 }
 0x13e   :  { %v543_v28 = vmax.f32 %v374_v24, 0.0  ;;  %1262 = vmatmul.mubr.f32.gmra.mxu0 %v544_v16  ;;  %v490_v30 = vadd.f32 %v489_v27, %v1619_v49  ;;  %v378_v32 = vadd.f32 %v377_v26, %v1615_v46  ;;  %v556_v40 = vmax.f32 %v498_v29, 0.0 }
 0x13f   :  { %v379_v34 = vpop.f32.mrf.mxu0  ;;  %1264 = vmatprep.mubr.f32.mxu0 %v547_v25  ;;  %v1220_v35 = vpop.f32.mrf.mxu1 }
 0x140   :  { %v380_v9 = vadd.f32 %v379_v34, %v1617_v47  ;;  %710 = vmatprep.mubr.f32.mxu1 %v543_v28  ;;  %v550_v36 = vmax.f32 %v490_v30, 0.0  ;;  %v545_v42 = vmax.f32 %v378_v32, 0.0  ;;  %v511_v45 = vadd.f32 %v1220_v35, %v1619_v49 }
 0x141   :  { %v381_v37 = vpop.f32.mrf.mxu0  ;;  %711 = vmatmul.mubr.f32.gmra.mxu1 %v542_v31  ;;  %v502_v38 = vpop.f32.mrf.mxu1 }
 0x142   :  { %v546_v39 = vmax.f32 %v380_v9, 0.0  ;;  %1265 = vmatmul.mubr.f32.gmra.mxu0 %v550_v36  ;;  %v503_v41 = vadd.f32 %v502_v38, %v1619_v49  ;;  %v382_v43 = vadd.f32 %v381_v37, %v1615_v46  ;;  %v565_v60 = vmax.f32 %v511_v45, 0.0 }
 0x143   :  { %v383_v44 = vpop.f32.mrf.mxu0  ;;  %1267 = vmatprep.mubr.f32.mxu0 %v553_v33  ;;  %v1221_v48 = vpop.f32.mrf.mxu1 }
 0x144   :  { %v384_v50 = vadd.f32 %v383_v44, %v1617_v47  ;;  %715 = vmatprep.mubr.f32.mxu1 %v546_v39  ;;  %v559_v51 = vmax.f32 %v503_v41, 0.0  ;;  %v514_v55 = vadd.f32 %v1221_v48, %v1619_v49  ;;  %v548_v57 = vmax.f32 %v382_v43, 0.0 }
 0x145   :  { %v387_v52 = vpop.f32.mrf.mxu0  ;;  %716 = vmatmul.mubr.f32.gmra.mxu1 %v545_v42  ;;  %v505_v53 = vpop.f32.mrf.mxu1 }
 0x146   :  { %v549_v54 = vmax.f32 %v384_v50, 0.0  ;;  %1268 = vmatmul.mubr.f32.gmra.mxu0 %v556_v40  ;;  %v506_v56 = vadd.f32 %v505_v53, %v1619_v49  ;;  %v388_v58 = vadd.f32 %v387_v52, %v1615_v46  ;;  %v568_v3 = vmax.f32 %v514_v55, 0.0 }
 0x147   :  { %v389_v59 = vpop.f32.mrf.mxu0  ;;  %1270 = vmatprep.mubr.f32.mxu0 %v559_v51  ;;  %v1224_v61 = vpop.f32.mrf.mxu1 }
 0x148   :  { %v390_v62 = vadd.f32 %v389_v59, %v1617_v47  ;;  %720 = vmatprep.mubr.f32.mxu1 %v549_v54  ;;  %v562_v63 = vmax.f32 %v506_v56, 0.0  ;;  %v551_v5 = vmax.f32 %v388_v58, 0.0  ;;  %v527_v8 = vadd.f32 %v1224_v61, %v1619_v49 }
 0x149   :  { %v391_v0 = vpop.f32.mrf.mxu0  ;;  %721 = vmatmul.mubr.f32.gmra.mxu1 %v548_v57  ;;  %v518_v1 = vpop.f32.mrf.mxu1 }
 0x14a   :  { %v552_v2 = vmax.f32 %v390_v62, 0.0  ;;  %1271 = vmatmul.mubr.f32.gmra.mxu0 %v562_v63  ;;  %v519_v4 = vadd.f32 %v518_v1, %v1619_v49  ;;  %v392_v6 = vadd.f32 %v391_v0, %v1615_v46  ;;  %v577_v21 = vmax.f32 %v527_v8, 0.0 }
 0x14b   :  { %v393_v7 = vpop.f32.mrf.mxu0  ;;  %v1225_v10 = vpop.f32.mrf.mxu1  ;;  %1273 = vmatprep.mubr.f32.mxu0 %v565_v60  ;;  %v1669_v8 = vstv %s629_s3 }
 0x14c   :  { %v394_v11 = vadd.f32 %v393_v7, %v1617_v47  ;;  %725 = vmatprep.mubr.f32.mxu1 %v552_v2  ;;  %v571_v12 = vmax.f32 %v519_v4, 0.0  ;;  %v530_v16 = vadd.f32 %v1225_v10, %v1619_v49  ;;  %v554_v18 = vmax.f32 %v392_v6, 0.0 }
 0x14d   :  { %v397_v13 = vpop.f32.mrf.mxu0  ;;  %726 = vmatmul.mubr.f32.gmra.mxu1 %v551_v5  ;;  %v521_v14 = vpop.f32.mrf.mxu1 }
 0x14e   :  { %v555_v15 = vmax.f32 %v394_v11, 0.0  ;;  %v522_v17 = vadd.f32 %v521_v14, %v1619_v49  ;;  %1274 = vmatmul.mubr.f32.gmra.mxu0 %v568_v3  ;;  %v398_v19 = vadd.f32 %v397_v13, %v1615_v46  ;;  %v580_v26 = vmax.f32 %v530_v16, 0.0 }
 0x14f   :  { %v399_v20 = vpop.f32.mrf.mxu0  ;;  %1276 = vmatprep.mubr.f32.mxu0 %v571_v12 }
 0x150   :  { %v400_v22 = vadd.f32 %v399_v20, %v1617_v47  ;;  %730 = vmatprep.mubr.f32.mxu1 %v555_v15  ;;  %v574_v23 = vmax.f32 %v522_v17, 0.0  ;;  %v557_v27 = vmax.f32 %v398_v19, 0.0 }
 0x151   :  { %v401_v24 = vpop.f32.mrf.mxu0  ;;  %731 = vmatmul.mubr.f32.gmra.mxu1 %v554_v18 }
 0x152   :  { %v558_v25 = vmax.f32 %v400_v22, 0.0  ;;  %1277 = vmatmul.mubr.f32.gmra.mxu0 %v574_v23  ;;  %v402_v28 = vadd.f32 %v401_v24, %v1615_v46 }
 0x153   :  { %v403_v49 = vpop.f32.mrf.mxu0  ;;  %1279 = vmatprep.mubr.f32.mxu0 %v577_v21 }
 0x154   :  { %v404_v29 = vadd.f32 %v403_v49, %v1617_v47  ;;  %735 = vmatprep.mubr.f32.mxu1 %v558_v25  ;;  %v560_v32 = vmax.f32 %v402_v28, 0.0 }
 0x155   :  { %v407_v30 = vpop.f32.mrf.mxu0  ;;  %736 = vmatmul.mubr.f32.gmra.mxu1 %v557_v27 }
 0x156   :  { %v561_v31 = vmax.f32 %v404_v29, 0.0  ;;  %1280 = vmatmul.mubr.f32.gmra.mxu0 %v580_v26  ;;  %v408_v33 = vadd.f32 %v407_v30, %v1615_v46 }
 0x157   :  { %v409_v34 = vpop.f32.mrf.mxu0 }
 0x158   :  { %v410_v35 = vadd.f32 %v409_v34, %v1617_v47  ;;  %740 = vmatprep.mubr.f32.mxu1 %v561_v31  ;;  %v563_v37 = vmax.f32 %v408_v33, 0.0 }
 0x159   :  { %v411_v9 = vpop.f32.mrf.mxu0  ;;  %741 = vmatmul.mubr.f32.gmra.mxu1 %v560_v32 }
 0x15a   :  { %v564_v36 = vmax.f32 %v410_v35, 0.0  ;;  %v412_v38 = vadd.f32 %v411_v9, %v1615_v46 }
 0x15b   :  { %v413_v39 = vpop.f32.mrf.mxu0 }
 0x15c   :  { %v414_v40 = vadd.f32 %v413_v39, %v1617_v47  ;;  %745 = vmatprep.mubr.f32.mxu1 %v564_v36  ;;  %v566_v43 = vmax.f32 %v412_v38, 0.0 }
 0x15d   :  { %v417_v41 = vpop.f32.mrf.mxu0  ;;  %746 = vmatmul.mubr.f32.gmra.mxu1 %v563_v37 }
 0x15e   :  { %v567_v42 = vmax.f32 %v414_v40, 0.0  ;;  %v418_v44 = vadd.f32 %v417_v41, %v1615_v46 }
 0x15f   :  { %v419_v45 = vpop.f32.mrf.mxu0 }
 0x160   :  { %v420_v48 = vadd.f32 %v419_v45, %v1617_v47  ;;  %750 = vmatprep.mubr.f32.mxu1 %v567_v42  ;;  %v569_v52 = vmax.f32 %v418_v44, 0.0 }
 0x161   :  { %v421_v50 = vpop.f32.mrf.mxu0  ;;  %751 = vmatmul.mubr.f32.gmra.mxu1 %v566_v43 }
 0x162   :  { %v570_v51 = vmax.f32 %v420_v48, 0.0  ;;  %v422_v53 = vadd.f32 %v421_v50, %v1615_v46 }
 0x163   :  { %v423_v54 = vpop.f32.mrf.mxu0 }
 0x164   :  { %v424_v55 = vadd.f32 %v423_v54, %v1617_v47  ;;  %755 = vmatprep.mubr.f32.mxu1 %v570_v51  ;;  %v572_v58 = vmax.f32 %v422_v53, 0.0 }
 0x165   :  { %v427_v56 = vpop.f32.mrf.mxu0  ;;  %756 = vmatmul.mubr.f32.gmra.mxu1 %v569_v52 }
 0x166   :  { %v573_v57 = vmax.f32 %v424_v55, 0.0  ;;  %v428_v59 = vadd.f32 %v427_v56, %v1615_v46 }
 0x167   :  { %v429_v60 = vpop.f32.mrf.mxu0 }
 0x168   :  { %v430_v61 = vadd.f32 %v429_v60, %v1617_v47  ;;  %760 = vmatprep.mubr.f32.mxu1 %v573_v57  ;;  %v575_v0 = vmax.f32 %v428_v59, 0.0 }
 0x169   :  { %v431_v62 = vpop.f32.mrf.mxu0  ;;  %761 = vmatmul.mubr.f32.gmra.mxu1 %v572_v58 }
 0x16a   :  { %v576_v63 = vmax.f32 %v430_v61, 0.0  ;;  %v432_v1 = vadd.f32 %v431_v62, %v1615_v46 }
 0x16b   :  { %v433_v2 = vpop.f32.mrf.mxu0 }
 0x16c   :  { %v434_v3 = vadd.f32 %v433_v2, %v1617_v47  ;;  %765 = vmatprep.mubr.f32.mxu1 %v576_v63  ;;  %v578_v5 = vmax.f32 %v432_v1, 0.0 }
 0x16d   :  { %766 = vmatmul.mubr.f32.gmra.mxu1 %v575_v0 }
 0x16e   :  { %v579_v4 = vmax.f32 %v434_v3, 0.0 }
 0x170   :  { %770 = vmatprep.mubr.f32.mxu1 %v579_v4 }
 0x171   :  { %771 = vmatmul.mubr.f32.gmra.mxu1 %v578_v5 }
 0x1f5   :  { %v1114_v6 = vpop.f32.mrf.mxu1 }
 0x1f7   :  { %v1115_v7 = vpop.f32.mrf.mxu1 }
 0x1f8   :  { %v1116_v10 = vadd.f32 %v1115_v7, %v1114_v6 }
 0x1f9   :  { %v1117_v11 = vpop.f32.mrf.mxu1 }
 0x1fa   :  { %v1260_v12 = vpop.f32.mrf.mxu0  ;;  %v698_v13 = vadd.f32 %v1116_v10, %v1669_v8 }
 0x1fb   :  { %v1118_v46 = vpop.f32.mrf.mxu1 }
 0x1fc   :  { %v1119_v14 = vadd.f32 %v1118_v46, %v1117_v11  ;;  %v842_v15 = vpop.f32.mrf.mxu0 }
 0x1fd   :  { %v843_v47 = vadd.f32 %v842_v15, %v698_v13  ;;  %v1120_v16 = vpop.f32.mrf.mxu1 }
 0x1fe   :  { %v703_v17 = vadd.f32 %v1119_v14, %v1669_v8  ;;  %v1263_v18 = vpop.f32.mrf.mxu0 }
 0x1ff   :  { %v921_v19 = vsub.f32 0.0, %v843_v47  ;;  %v1121_v20 = vpop.f32.mrf.mxu1 }
 0x200   :  { %v848_v21 = vadd.f32 %v1260_v12, %v703_v17  ;;  %v1122_v22 = vadd.f32 %v1121_v20, %v1120_v16  ;;  %v852_v25 = vpop.f32.mrf.mxu0 }
 0x201   :  { %v937_v23 = vmul.f32 1.442695, %v921_v19  ;;  %v1123_v24 = vpop.f32.mrf.mxu1 }
 0x202   :  { %v922_v26 = vsub.f32 0.0, %v848_v21  ;;  %v708_v27 = vadd.f32 %v1122_v22, %v1669_v8  ;;  %v1266_v32 = vpop.f32.mrf.mxu0 }
 0x203   :  { %1333 = vpow2.f32 %v937_v23  ;;  %v1124_v28 = vpop.f32.mrf.mxu1 }
 0x204   :  { %v939_v49 = vmul.f32 1.442695, %v922_v26  ;;  %v1125_v29 = vadd.f32 %v1124_v28, %v1123_v24  ;;  %v853_v30 = vadd.f32 %v852_v25, %v708_v27  ;;  %v862_v39 = vpop.f32.mrf.mxu0 }
 0x205   :  { %v1126_v31 = vpop.f32.mrf.mxu1 }
 0x206   :  { %1335 = vpow2.f32 %v939_v49  ;;  %v713_v33 = vadd.f32 %v1125_v29, %v1669_v8  ;;  %v923_v34 = vsub.f32 0.0, %v853_v30  ;;  %v1269_v50 = vpop.f32.mrf.mxu0 }
 0x207   :  { %v1127_v35 = vpop.f32.mrf.mxu1 }
 0x208   :  { %v858_v9 = vadd.f32 %v1263_v18, %v713_v33  ;;  %v941_v36 = vmul.f32 1.442695, %v923_v34  ;;  %v1128_v37 = vadd.f32 %v1127_v35, %v1126_v31  ;;  %v872_v60 = vpop.f32.mrf.mxu0 }
 0x209   :  { %v1129_v38 = vpop.f32.mrf.mxu1 }
 0x20a   :  { %v924_v40 = vsub.f32 0.0, %v858_v9  ;;  %1337 = vpow2.f32 %v941_v36  ;;  %v718_v41 = vadd.f32 %v1128_v37, %v1669_v8  ;;  %v1272_v6 = vpop.f32.mrf.mxu0 }
 0x20b   :  { %v1130_v42 = vpop.f32.mrf.mxu1 }
 0x20c   :  { %v943_v43 = vmul.f32 1.442695, %v924_v40  ;;  %v1131_v44 = vadd.f32 %v1130_v42, %v1129_v38  ;;  %v863_v45 = vadd.f32 %v862_v39, %v718_v41  ;;  %v882_v16 = vpop.f32.mrf.mxu0 }
 0x20d   :  { %v1132_v48 = vpop.f32.mrf.mxu1 }
 0x20e   :  { %1339 = vpow2.f32 %v943_v43  ;;  %v723_v51 = vadd.f32 %v1131_v44, %v1669_v8  ;;  %v925_v52 = vsub.f32 0.0, %v863_v45  ;;  %v1275_v26 = vpop.f32.mrf.mxu0 }
 0x20f   :  { %v1133_v53 = vpop.f32.mrf.mxu1 }
 0x210   :  { %v1334_v54 = vpop.eup %1333  ;;  %v868_v55 = vadd.f32 %v1266_v32, %v723_v51  ;;  %v945_v56 = vmul.f32 1.442695, %v925_v52  ;;  %v1134_v57 = vadd.f32 %v1133_v53, %v1132_v48  ;;  %v892_v9 = vpop.f32.mrf.mxu0 }
 0x211   :  { %v969_v58 = vadd.f32 1.0, %v1334_v54  ;;  %v1135_v59 = vpop.f32.mrf.mxu1 }
 0x212   :  { %v926_v61 = vsub.f32 0.0, %v868_v55  ;;  %1341 = vpow2.f32 %v945_v56  ;;  %v728_v62 = vadd.f32 %v1134_v57, %v1669_v8  ;;  %v1278_v52 = vpop.f32.mrf.mxu0 }
 0x213   :  { %v1336_v63 = vpop.eup %1335  ;;  %1343 = vrcp.f32 %v969_v58  ;;  %v1136_v0 = vpop.f32.mrf.mxu1 }
 0x214   :  { %v970_v1 = vadd.f32 1.0, %v1336_v63  ;;  %v947_v2 = vmul.f32 1.442695, %v926_v61  ;;  %v1137_v3 = vadd.f32 %v1136_v0, %v1135_v59  ;;  %v873_v4 = vadd.f32 %v872_v60, %v728_v62  ;;  %v902_v63 = vpop.f32.mrf.mxu0 }
 0x215   :  { %v1138_v5 = vpop.f32.mrf.mxu1 }
 0x216   :  { %1345 = vrcp.f32 %v970_v1  ;;  %v733_v7 = vadd.f32 %v1137_v3, %v1669_v8  ;;  %v927_v10 = vsub.f32 0.0, %v873_v4 }
 0x217   :  { %v1338_v11 = vpop.eup %1337  ;;  %1347 = vpow2.f32 %v947_v2  ;;  %v1139_v12 = vpop.f32.mrf.mxu1 }
 0x218   :  { %v971_v13 = vadd.f32 1.0, %v1338_v11  ;;  %v878_v46 = vadd.f32 %v1269_v50, %v733_v7  ;;  %v949_v14 = vmul.f32 1.442695, %v927_v10  ;;  %v1140_v15 = vadd.f32 %v1139_v12, %v1138_v5  ;;  %v1281_v12 = vpop.f32.mrf.mxu0 }
 0x219   :  { %v1141_v47 = vpop.f32.mrf.mxu1 }
 0x21a   :  { %1349 = vrcp.f32 %v971_v13  ;;  %v928_v17 = vsub.f32 0.0, %v878_v46  ;;  %v738_v18 = vadd.f32 %v1140_v15, %v1669_v8 }
 0x21b   :  { %v1340_v19 = vpop.eup %1339  ;;  %1351 = vpow2.f32 %v949_v14  ;;  %v1142_v20 = vpop.f32.mrf.mxu1 }
 0x21c   :  { %v972_v21 = vadd.f32 1.0, %v1340_v19  ;;  %v951_v22 = vmul.f32 1.442695, %v928_v17  ;;  %v1143_v23 = vadd.f32 %v1142_v20, %v1141_v47  ;;  %v883_v24 = vadd.f32 %v882_v16, %v738_v18 }
 0x21d   :  { %v1144_v25 = vpop.f32.mrf.mxu1 }
 0x21e   :  { %1353 = vrcp.f32 %v972_v21  ;;  %v743_v27 = vadd.f32 %v1143_v23, %v1669_v8  ;;  %v929_v28 = vsub.f32 0.0, %v883_v24  ;;  %v912_v21 = vpop.f32.mrf.mxu0 }
 0x21f   :  { %v1342_v49 = vpop.eup %1341  ;;  %1355 = vpow2.f32 %v951_v22  ;;  %v1145_v29 = vpop.f32.mrf.mxu1 }
 0x220   :  { %v1344_v30 = vpop.eup %1343  ;;  %v973_v31 = vadd.f32 1.0, %v1342_v49  ;;  %v888_v32 = vadd.f32 %v1272_v6, %v743_v27  ;;  %v953_v33 = vmul.f32 1.442695, %v929_v28  ;;  %v1146_v34 = vadd.f32 %v1145_v29, %v1144_v25 }
 0x221   :  { %1001 = vst [vmem:[%s1741_s7] sm:$0xff] %v1344_v30  ;;  %v1147_v35 = vpop.f32.mrf.mxu1 }
 0x222   :  { %1357 = vrcp.f32 %v973_v31  ;;  %v930_v36 = vsub.f32 0.0, %v888_v32  ;;  %v748_v37 = vadd.f32 %v1146_v34, %v1669_v8 }
 0x223   :  { %v1346_v38 = vpop.eup %1345  ;;  %1359 = vpow2.f32 %v953_v33  ;;  %v1148_v39 = vpop.f32.mrf.mxu1 }
 0x224   :  { %v1348_v40 = vpop.eup %1347  ;;  %1002 = vst [vmem:[%s1741_s7 + $0x8] sm:$0xff] %v1346_v38  ;;  %v955_v41 = vmul.f32 1.442695, %v930_v36  ;;  %v1149_v42 = vadd.f32 %v1148_v39, %v1147_v35  ;;  %v893_v43 = vadd.f32 %v892_v9, %v748_v37 }
 0x225   :  { %v974_v44 = vadd.f32 1.0, %v1348_v40  ;;  %v1150_v45 = vpop.f32.mrf.mxu1 }
 0x226   :  { %1361 = vpow2.f32 %v955_v41  ;;  %v753_v48 = vadd.f32 %v1149_v42, %v1669_v8  ;;  %v931_v50 = vsub.f32 0.0, %v893_v43 }
 0x227   :  { %v1350_v51 = vpop.eup %1349  ;;  %1363 = vrcp.f32 %v974_v44  ;;  %v1151_v53 = vpop.f32.mrf.mxu1 }
 0x228   :  { %v1352_v54 = vpop.eup %1351  ;;  %1003 = vst [vmem:[%s1741_s7 + $0x10] sm:$0xff] %v1350_v51  ;;  %v898_v55 = vadd.f32 %v1275_v26, %v753_v48  ;;  %v957_v56 = vmul.f32 1.442695, %v931_v50  ;;  %v1152_v57 = vadd.f32 %v1151_v53, %v1150_v45 }
 0x229   :  { %v975_v58 = vadd.f32 1.0, %v1352_v54  ;;  %v1153_v59 = vpop.f32.mrf.mxu1 }
 0x22a   :  { %v932_v60 = vsub.f32 0.0, %v898_v55  ;;  %1365 = vpow2.f32 %v957_v56  ;;  %v758_v61 = vadd.f32 %v1152_v57, %v1669_v8 }
 0x22b   :  { %v1354_v62 = vpop.eup %1353  ;;  %1367 = vrcp.f32 %v975_v58  ;;  %v1154_v0 = vpop.f32.mrf.mxu1 }
 0x22c   :  { %v1356_v1 = vpop.eup %1355  ;;  %1004 = vst [vmem:[%s1741_s7 + $0x18] sm:$0xff] %v1354_v62  ;;  %v959_v2 = vmul.f32 1.442695, %v932_v60  ;;  %v903_v3 = vadd.f32 %v902_v63, %v758_v61  ;;  %v1155_v4 = vadd.f32 %v1154_v0, %v1153_v59 }
 0x22d   :  { %v976_v5 = vadd.f32 1.0, %v1356_v1  ;;  %v1156_v6 = vpop.f32.mrf.mxu1 }
 0x22e   :  { %1369 = vpow2.f32 %v959_v2  ;;  %v933_v7 = vsub.f32 0.0, %v903_v3  ;;  %v763_v10 = vadd.f32 %v1155_v4, %v1669_v8 }
 0x22f   :  { %v1358_v11 = vpop.eup %1357  ;;  %1371 = vrcp.f32 %v976_v5  ;;  %v1157_v13 = vpop.f32.mrf.mxu1 }
 0x230   :  { %v1360_v46 = vpop.eup %1359  ;;  %1005 = vst [vmem:[%s1741_s7 + $0x20] sm:$0xff] %v1358_v11  ;;  %v961_v14 = vmul.f32 1.442695, %v933_v7  ;;  %v908_v15 = vadd.f32 %v1278_v52, %v763_v10  ;;  %v1158_v47 = vadd.f32 %v1157_v13, %v1156_v6 }
 0x231   :  { %v977_v16 = vadd.f32 1.0, %v1360_v46  ;;  %v1159_v17 = vpop.f32.mrf.mxu1 }
 0x232   :  { %1373 = vpow2.f32 %v961_v14  ;;  %v934_v18 = vsub.f32 0.0, %v908_v15  ;;  %v768_v19 = vadd.f32 %v1158_v47, %v1669_v8 }
 0x233   :  { %v1362_v20 = vpop.eup %1361  ;;  %1375 = vrcp.f32 %v977_v16  ;;  %v1160_v22 = vpop.f32.mrf.mxu1 }
 0x234   :  { %v1364_v23 = vpop.eup %1363  ;;  %v978_v24 = vadd.f32 1.0, %v1362_v20  ;;  %v963_v25 = vmul.f32 1.442695, %v934_v18  ;;  %v913_v26 = vadd.f32 %v912_v21, %v768_v19  ;;  %v1161_v27 = vadd.f32 %v1160_v22, %v1159_v17 }
 0x235   :  { %1006 = vst [vmem:[%s1741_s7 + $0x28] sm:$0xff] %v1364_v23 }
 0x236   :  { %1377 = vrcp.f32 %v978_v24  ;;  %v935_v28 = vsub.f32 0.0, %v913_v26  ;;  %v773_v49 = vadd.f32 %v1161_v27, %v1669_v8 }
 0x237   :  { %v1366_v29 = vpop.eup %1365  ;;  %1379 = vpow2.f32 %v963_v25 }
 0x238   :  { %v1368_v30 = vpop.eup %1367  ;;  %v979_v31 = vadd.f32 1.0, %v1366_v29  ;;  %v965_v32 = vmul.f32 1.442695, %v935_v28  ;;  %v918_v33 = vadd.f32 %v1281_v12, %v773_v49 }
 0x239   :  { %1007 = vst [vmem:[%s1741_s7 + $0x30] sm:$0xff] %v1368_v30 }
 0x23a   :  { %1381 = vrcp.f32 %v979_v31  ;;  %v936_v34 = vsub.f32 0.0, %v918_v33 }
 0x23b   :  { %v1370_v35 = vpop.eup %1369  ;;  %1383 = vpow2.f32 %v965_v32 }
 0x23c   :  { %v1372_v9 = vpop.eup %1371  ;;  %v980_v36 = vadd.f32 1.0, %v1370_v35  ;;  %v967_v37 = vmul.f32 1.442695, %v936_v34 }
 0x23d   :  { %1008 = vst [vmem:[%s1741_s7 + $0x38] sm:$0xff] %v1372_v9 }
 0x23e   :  { %1385 = vrcp.f32 %v980_v36 }
 0x23f   :  { %v1374_v8 = vpop.eup %1373  ;;  %1387 = vpow2.f32 %v967_v37 }
 0x240   :  { %v1376_v38 = vpop.eup %1375  ;;  %v981_v39 = vadd.f32 1.0, %v1374_v8 }
 0x241   :  { %1009 = vst [vmem:[%s1741_s7 + $0x40] sm:$0xff] %v1376_v38 }
 0x242   :  { %1389 = vrcp.f32 %v981_v39 }
 0x243   :  { %v1378_v40 = vpop.eup %1377 }
 0x244   :  { %v1380_v41 = vpop.eup %1379  ;;  %1010 = vst [vmem:[%s1741_s7 + $0x48] sm:$0xff] %v1378_v40 }
 0x245   :  { %v982_v42 = vadd.f32 1.0, %v1380_v41 }
 0x247   :  { %v1382_v43 = vpop.eup %1381  ;;  %1391 = vrcp.f32 %v982_v42 }
 0x248   :  { %v1384_v44 = vpop.eup %1383  ;;  %1011 = vst [vmem:[%s1741_s7 + $0x50] sm:$0xff] %v1382_v43 }
 0x249   :  { %v983_v45 = vadd.f32 1.0, %v1384_v44 }
 0x24b   :  { %v1386_v48 = vpop.eup %1385  ;;  %1393 = vrcp.f32 %v983_v45 }
 0x24c   :  { %v1388_v50 = vpop.eup %1387  ;;  %1012 = vst [vmem:[%s1741_s7 + $0x58] sm:$0xff] %v1386_v48 }
 0x24d   :  { %v984_v51 = vadd.f32 1.0, %v1388_v50 }
 0x24f   :  { %v1390_v52 = vpop.eup %1389  ;;  %1395 = vrcp.f32 %v984_v51 }
 0x250   :  { %1013 = vst [vmem:[%s1741_s7 + $0x60] sm:$0xff] %v1390_v52 }
 0x254   :  { %v1392_v53 = vpop.eup %1391 }
 0x255   :  { %1014 = vst [vmem:[%s1741_s7 + $0x68] sm:$0xff] %v1392_v53 }
 0x258   :  { %v1394_v54 = vpop.eup %1393 }
 0x259   :  { %1015 = vst [vmem:[%s1741_s7 + $0x70] sm:$0xff] %v1394_v54 }
 0x25c   :  { %v1396_v55 = vpop.eup %1395 }
 0x25d   :  { %1016 = vst [vmem:[%s1741_s7 + $0x78] sm:$0xff] %v1396_v55 }
 0x25e   :  { %1021 = vsyncpa [#allocation8], 1 }
 0x25f   :  { %1022 = vsyncpa [#allocation10], 1 }
 0x260   :  { %1023 = vsyncpa [#allocation13], 1 }

</bundles_post_ra>
